<compile_context>
chip_gen: v7x
topology: tpu7x:2x2x1
jax: 0.10.0
libtpu: 0.0.40
codegen_flags: <defaults>
</compile_context>

<pallas_src>
import math

import jax
import jax.numpy as jnp
from jax.experimental import pallas as pl
from jax.experimental.pallas import tpu as pltpu


def _round_up(a, m):
    return ((a + m - 1) // m) * m


def _forecast_head_kernel(x_ref, add_ref, w_ref, o_ref):
    # x_ref   : VMEM (TILE_G, F*D)  folded activations (F tokens per row)
    # add_ref : VMEM (TILE_G, F)    per-token addend: (pe @ w)[times] + bias
    # w_ref   : VMEM (F*D, F)       block-diagonal fc_1 weight (grid-resident)
    # o_ref   : VMEM (TILE_G, F)    output tile (token-major when flattened)
    x = x_ref[...].astype(jnp.float32)
    y = jnp.dot(x, w_ref[...], preferred_element_type=jnp.float32)  # MXU GEMV
    o_ref[...] = y + add_ref[...]


def forecast_head(x, times, pe, w, b, *, tile_t=None):
    """x: (B, S, D), times: (B, S) int, pe: (max_len, D), w: (D, 1), b: ()
       -> (B, S, 1)"""
    B, S, D = x.shape
    T = B * S

    # ---- fold factor: pack F tokens per 128-lane row when D divides 128 ----
    if D < 128 and 128 % D == 0:
        F = 128 // D
    else:
        F = 1

    # ---- wrapper-side algebraic rewrite (tiny cost, O(max_len*D + T)) ----
    w_col = w.reshape(D).astype(jnp.float32)                       # (D,)
    pew = pe.astype(jnp.float32).reshape(-1, D) @ w_col            # (max_len,)
    addend = pew[times.reshape(T)] + jnp.asarray(b, jnp.float32)   # (T,)

    # Block-diagonal weight so one matmul projects F independent tokens.
    if F > 1:
        w_block = (jnp.eye(F, dtype=jnp.float32)[:, None, :]
                   * w_col[None, :, None]).reshape(F * D, F)       # (128, F)
    else:
        w_block = w_col.reshape(D, 1)                              # (D, 1)

    # ---- tile-size selection ----
    granule = max(128, 8 * F)        # keeps folded blocks (8,128)-aligned
    itemsize = jnp.dtype(x.dtype).itemsize
    if tile_t is None:
        target_bytes = 2 * 1024 * 1024      # per pipeline buffer (x2 dbl-buf)
        tile_t = target_bytes // (D * itemsize)
    tile_t = int(min(max(int(tile_t), granule), 32768, _round_up(T, granule)))
    tile_t = _round_up(tile_t, granule)

    num_tiles = pl.cdiv(T, tile_t)
    t_pad = num_tiles * tile_t

    x_flat = x.reshape(T, D)
    if t_pad != T:
        # Padded rows are zeros -> compute 0 + 0 addend, sliced off below.
        x_flat = jnp.pad(x_flat, ((0, t_pad - T), (0, 0)))
        addend = jnp.pad(addend, (0, t_pad - T))

    tile_g = tile_t // F
    x_fold = x_flat.reshape(t_pad // F, F * D)     # contiguous reshape: free
    add_fold = addend.reshape(t_pad // F, F)

    out = pl.pallas_call(
        _forecast_head_kernel,
        out_shape=jax.ShapeDtypeStruct((t_pad // F, F), jnp.float32),
        grid=(num_tiles,),
        in_specs=[
            pl.BlockSpec((tile_g, F * D), lambda i: (i, 0)),   # x stream (pipelined)
            pl.BlockSpec((tile_g, F), lambda i: (i, 0)),       # addend tile
            pl.BlockSpec((F * D, F), lambda i: (0, 0)),        # weight (resident)
        ],
        out_specs=pl.BlockSpec((tile_g, F), lambda i: (i, 0)),
        compiler_params=pltpu.CompilerParams(
            dimension_semantics=("parallel",),
        ),
    )(x_fold, add_fold, w_block)

    return out.reshape(t_pad)[:T].reshape(B, S, 1).astype(x.dtype)


def make_pe_table(max_len, input_dim):
    """Reproduces the PyTorch buffer `pe` (squeezed to (max_len, input_dim))."""
    position = jnp.arange(max_len, dtype=jnp.float32)[:, None]          # (max_len, 1)
    div_term = jnp.exp(jnp.arange(0, input_dim, 2, dtype=jnp.float32)
                       * (-math.log(10000.0) / input_dim))              # (ceil(D/2),)
    pe = jnp.zeros((max_len, input_dim), jnp.float32)
    pe = pe.at[:, 0::2].set(jnp.sin(position * div_term))
    pe = pe.at[:, 1::2].set(jnp.cos(position * div_term)[:, : input_dim // 2])
    return pe


def reference_forecast_head(x, times, pe, w, b):
    """Pure-JAX reference mirroring the PyTorch forward."""
    pe_g = pe[times]                      # (B, S, D)
    xp = x + pe_g
    return xp @ w + b                     # (B, S, 1)


if __name__ == "__main__":
    # Small deterministic config.
    B, S, D, MAX_LEN = 2, 8, 32, 16

    key = jax.random.PRNGKey(0)
    kx, kt, kw, kb = jax.random.split(key, 4)

    x = jax.random.normal(kx, (B, S, D), dtype=jnp.float32)
    times = jax.random.randint(kt, (B, S), 0, MAX_LEN, dtype=jnp.int32)

    # Deterministic Linear(input_dim, 1) parameters (PyTorch-style uniform init).
    bound = 1.0 / math.sqrt(D)
    w = jax.random.uniform(kw, (D, 1), jnp.float32, -bound, bound)
    b = jax.random.uniform(kb, (), jnp.float32, -bound, bound)

    pe = make_pe_table(MAX_LEN, D)

    out = forecast_head(x, times, pe, w, b)
    out = jax.block_until_ready(out)

    ref = reference_forecast_head(x, times, pe, w, b)
    assert out.shape == (B, S, 1)
    assert jnp.allclose(out, ref, atol=1e-5, rtol=1e-5), "mismatch vs reference"

    print("KERNEL_OK")
</pallas_src>

<mosaic_0001>
module attributes {stable_mosaic.version = 11 : i64} {
  func.func @_forecast_head_kernel(%arg0: i32, %arg1: memref<32x128xf32, #tpu.memory_space<vmem>>, %arg2: memref<32x4xf32, #tpu.memory_space<vmem>>, %arg3: memref<128x4xf32, #tpu.memory_space<vmem>>, %arg4: memref<32x4xf32, #tpu.memory_space<vmem>>) attributes {dimension_semantics = [#tpu.dimension_semantics<parallel>], iteration_bounds = array<i64: 1>, scalar_prefetch = 0 : i64, scratch_operands = 0 : i64, tpu.core_type = #tpu.core_type<tc>, window_params = [{transform_indices = @transform_0, window_bounds = array<i64: 32, 128>}, {transform_indices = @transform_1, window_bounds = array<i64: 32, 4>}, {pipeline_mode = #tpu.pipeline_mode<synchronous>, transform_indices = @transform_2, window_bounds = array<i64: 128, 4>}, {transform_indices = @transform_3, window_bounds = array<i64: 32, 4>}]} {
    %c0 = arith.constant 0 : index
    %c0_0 = arith.constant 0 : index
    %0 = vector.load %arg1[%c0, %c0_0] : memref<32x128xf32, #tpu.memory_space<vmem>>, vector<32x128xf32>
    %c0_1 = arith.constant 0 : index
    %c0_2 = arith.constant 0 : index
    %1 = vector.load %arg3[%c0_1, %c0_2] : memref<128x4xf32, #tpu.memory_space<vmem>>, vector<128x4xf32>
    %cst = arith.constant dense<0.000000e+00> : vector<32x4xf32>
    %2 = tpu.matmul %0, %1, %cst {dimension_numbers = #tpu.dot_dimension_numbers<[1], [0], [0], [1], [0, 0, 1, 1], [], []>} : vector<32x128xf32>, vector<128x4xf32>, vector<32x4xf32> -> vector<32x4xf32>
    %c0_3 = arith.constant 0 : index
    %c0_4 = arith.constant 0 : index
    %3 = vector.load %arg2[%c0_3, %c0_4] : memref<32x4xf32, #tpu.memory_space<vmem>>, vector<32x4xf32>
    %4 = arith.addf %2, %3 : vector<32x4xf32>
    %c0_5 = arith.constant 0 : index
    %c0_6 = arith.constant 0 : index
    %5 = vector.load %arg4[%c0_5, %c0_6] : memref<32x4xf32, #tpu.memory_space<vmem>>, vector<32x4xf32>
    tpu.vector_store %arg4[%c0_5, %c0_6], %4 {strides = array<i32>} : memref<32x4xf32, #tpu.memory_space<vmem>>, vector<32x4xf32>,
    return
  }
  func.func @transform_0(%arg0: i32) -> (i32, i32) {
    %c0_i32 = arith.constant 0 : i32
    %c0_i32_0 = arith.constant 0 : i32
    return %arg0, %c0_i32 : i32, i32
  }
  func.func @transform_1(%arg0: i32) -> (i32, i32) {
    %c0_i32 = arith.constant 0 : i32
    %c0_i32_0 = arith.constant 0 : i32
    return %arg0, %c0_i32 : i32, i32
  }
  func.func @transform_2(%arg0: i32) -> (i32, i32) {
    %c0_i32 = arith.constant 0 : i32
    %c0_i32_0 = arith.constant 0 : i32
    %c0_i32_1 = arith.constant 0 : i32
    return %c0_i32, %c0_i32_0 : i32, i32
  }
  func.func @transform_3(%arg0: i32) -> (i32, i32) {
    %c0_i32 = arith.constant 0 : i32
    %c0_i32_0 = arith.constant 0 : i32
    return %arg0, %c0_i32 : i32, i32
  }
}

</mosaic_0001>

<bundles_post_ra>
// kernel: tpu_custom_call.1
= control target key start
LH: loop header
LB: loop body
LE: loop exit
PB: predicated region body
PF: predicated region fallthrough
CT: control target
= control target key end

     0   :  { %vm123_vm0 = vcmask 31744   ;;  %s342_s2 = inlined_call_operand.vmem [shape: f32[128,4], index: 2, kind: input, shape index: {}]   ;;  %s343_s0 = inlined_call_operand.vmem [shape: f32[32,128], index: 0, kind: input, shape index: {}]   ;;  %s344_s1 = inlined_call_operand.vmem [shape: f32[32,4], index: 1, kind: input, shape index: {}]   ;;  %s345_s3 = inlined_call_operand.vmem [shape: f32[32,4], index: 3, kind: output, shape index: {}]  }
   0x1   :  { %v18_v0 = vld [vmem:[%s342_s2] sm:$0xff]  ;;  %v19_v1 = vld [vmem:[%s342_s2 + $0x8] sm:$0xff]  ;;  %v20_v2 = vld [vmem:[%s342_s2 + $0x10] sm:$0xff] }
   0x2   :  { %v190_v3 = vpack.c.bf16 %v19_v1, %v18_v0  ;;  %v21_v4 = vld [vmem:[%s342_s2 + $0x18] sm:$0xff]  ;;  %v22_v6 = vld [vmem:[%s342_s2 + $0x20] sm:$0xff]  ;;  %v23_v7 = vld [vmem:[%s342_s2 + $0x28] sm:$0xff] }
   0x3   :  { %v194_v5 = vpack.c.bf16 %v21_v4, %v20_v2  ;;  %v198_v8 = vpack.c.bf16 %v23_v7, %v22_v6  ;;  %v14_v9 = vld [vmem:[%s343_s0] sm:$0xff]  ;;  %v16_v10 = vld [vmem:[%s343_s0 + $0x10] sm:$0xff]  ;;  %v25_v12 = vld [vmem:[%s342_s2 + $0x38] sm:$0xff] }
   0x4   :  { %191 = vmatprep.subr.bf16.mxu0 %v190_v3  ;;  %222 = vmatprep.subr.bf16.mxu1 %v190_v3  ;;  %v24_v11 = vld [vmem:[%s342_s2 + $0x30] sm:$0xff]  ;;  %v26_v14 = vld [vmem:[%s342_s2 + $0x40] sm:$0xff]  ;;  %v27_v15 = vld [vmem:[%s342_s2 + $0x48] sm:$0xff] }
   0x5   :  { %193 = vmatpush3.bf16.msra.mxu0 %v190_v3  ;;  %230 = vmatpush3.bf16.msra.mxu1 %v190_v3  ;;  %v202_v13 = vpack.c.bf16 %v25_v12, %v24_v11  ;;  %v206_v16 = vpack.c.bf16 %v27_v15, %v26_v14  ;;  %v28_v17 = vld [vmem:[%s342_s2 + $0x50] sm:$0xff]  ;;  %v29_v18 = vld [vmem:[%s342_s2 + $0x58] sm:$0xff]  ;;  %v30_v20 = vld [vmem:[%s342_s2 + $0x60] sm:$0xff] }
   0x6   :  { %195 = vmatprep.subr.bf16.mxu0 %v194_v5  ;;  %223 = vmatprep.subr.bf16.mxu1 %v194_v5  ;;  %v210_v19 = vpack.c.bf16 %v29_v18, %v28_v17  ;;  %v31_v21 = vld [vmem:[%s342_s2 + $0x68] sm:$0xff]  ;;  %v32_v23 = vld [vmem:[%s342_s2 + $0x70] sm:$0xff]  ;;  %v33_v24 = vld [vmem:[%s342_s2 + $0x78] sm:$0xff] }
   0x7   :  { %184 = vmatprep.mubr.f32.mxu0 %v14_v9  ;;  %187 = vmatprep.mubr.f32.mxu1 %v16_v10  ;;  %v214_v22 = vpack.c.bf16 %v31_v21, %v30_v20  ;;  %v218_v25 = vpack.c.bf16 %v33_v24, %v32_v23  ;;  %v15_v26 = vld [vmem:[%s343_s0 + $0x8] sm:$0xff]  ;;  %v17_v27 = vld [vmem:[%s343_s0 + $0x18] sm:$0xff]  ;;  %v34_v30 = vld [vmem:[%s344_s1] sm:$0xff] }
   0x8   :  { %v35_v28 = vld [vmem:[%s344_s1 + $0x8] sm:$0xff]  ;;  %v37_v29 = vld [vmem:[%s344_s1 + $0x18] sm:$0xff]  ;;  %v36_v31 = vld [vmem:[%s344_s1 + $0x10] sm:$0xff] }
   0x9   :  { %197 = vmatpush3.bf16.msra.mxu0 %v194_v5  ;;  %231 = vmatpush3.bf16.msra.mxu1 %v194_v5 }
   0xa   :  { %199 = vmatprep.subr.bf16.mxu0 %v198_v8  ;;  %224 = vmatprep.subr.bf16.mxu1 %v198_v8 }
   0xd   :  { %201 = vmatpush3.bf16.msra.mxu0 %v198_v8  ;;  %232 = vmatpush3.bf16.msra.mxu1 %v198_v8 }
   0xe   :  { %203 = vmatprep.subr.bf16.mxu0 %v202_v13  ;;  %225 = vmatprep.subr.bf16.mxu1 %v202_v13 }
  0x11   :  { %205 = vmatpush3.bf16.msra.mxu0 %v202_v13  ;;  %233 = vmatpush3.bf16.msra.mxu1 %v202_v13 }
  0x12   :  { %207 = vmatprep.subr.bf16.mxu0 %v206_v16  ;;  %226 = vmatprep.subr.bf16.mxu1 %v206_v16 }
  0x15   :  { %209 = vmatpush3.bf16.msra.mxu0 %v206_v16  ;;  %234 = vmatpush3.bf16.msra.mxu1 %v206_v16 }
  0x16   :  { %211 = vmatprep.subr.bf16.mxu0 %v210_v19  ;;  %227 = vmatprep.subr.bf16.mxu1 %v210_v19 }
  0x19   :  { %213 = vmatpush3.bf16.msra.mxu0 %v210_v19  ;;  %235 = vmatpush3.bf16.msra.mxu1 %v210_v19 }
  0x1a   :  { %215 = vmatprep.subr.bf16.mxu0 %v214_v22  ;;  %228 = vmatprep.subr.bf16.mxu1 %v214_v22 }
  0x1d   :  { %217 = vmatpush3.bf16.msra.mxu0 %v214_v22  ;;  %236 = vmatpush3.bf16.msra.mxu1 %v214_v22 }
  0x1e   :  { %219 = vmatprep.subr.bf16.mxu0 %v218_v25  ;;  %229 = vmatprep.subr.bf16.mxu1 %v218_v25 }
  0x21   :  { %221 = vmatpush3.bf16.msra.mxu0 %v218_v25  ;;  %237 = vmatpush3.bf16.msra.mxu1 %v218_v25 }
  0x24   :  { %185 = vmatmul.mubr.f32.vlgmr.msra.gmra.mrb[0].mxu0 %v15_v26  ;;  %188 = vmatmul.mubr.f32.vlgmr.msra.gmra.mrb[0].mxu1 %v17_v27 }
  0xf7   :  { %v186_v32 = vpop.f32.mrb[0].mxu0  ;;  %v189_v33 = vpop.f32.mrb[0].mxu1 }
  0xf8   :  { %v110_v34 = vadd.f32 %v186_v32, %v35_v28  ;;  %v120_v35 = vadd.f32 %v189_v33, %v37_v29  ;;  %v104_v36 = vpop.f32.mrb[1].mxu0  ;;  %v114_v37 = vpop.f32.mrb[1].mxu1 }
  0xf9   :  { %v105_v38 = vadd.f32 %v104_v36, %v34_v30  ;;  %v115_v39 = vadd.f32 %v114_v37, %v36_v31 }
  0xfa   :  { %125 = vst.msk [vmem:[%s345_s3 + $0x8] sm:$0xff] %vm123_vm0, %v110_v34  ;;  %127 = vst.msk [vmem:[%s345_s3 + $0x18] sm:$0xff] %vm123_vm0, %v120_v35 }
  0xfb   :  { %124 = vst.msk [vmem:[%s345_s3] sm:$0xff] %vm123_vm0, %v105_v38  ;;  %126 = vst.msk [vmem:[%s345_s3 + $0x10] sm:$0xff] %vm123_vm0, %v115_v39 }

</bundles_post_ra>
